<compile_context>
chip_gen: v7x
topology: tpu7x:2x2x1
jax: 0.10.0
libtpu: 0.0.40
codegen_flags: <defaults>
</compile_context>

<pallas_src>
import jax
import jax.numpy as jnp
from jax import lax
from jax.experimental import pallas as pl
from jax.experimental.pallas import tpu as pltpu


def lstm_tagger_kernel(emb_ref, wih_ref, whh_ref, b_ref, wtag_ref, btag_ref,
                       out_ref, xw_ref, hall_ref):
    T = emb_ref.shape[0]
    H = whh_ref.shape[0]

    # ---- Hoisted input projection: one batched MXU matmul (T,E)x(E,4H) + bias. ----
    xw_ref[...] = (jnp.dot(emb_ref[...], wih_ref[...],
                           preferred_element_type=jnp.float32)
                   + b_ref[...])                                    # (T, 4H)

    whh = whh_ref[...]                                              # (H, 4H)

    def step(t, carry):
        h, c = carry                                                # (1, H) each
        # Only the h-dependent matmul remains on the sequential carry chain.
        gates = (xw_ref[pl.ds(t, 1), :]
                 + jnp.dot(h, whh, preferred_element_type=jnp.float32))  # (1, 4H)
        # Full-width EUP nonlinearities (one sigmoid, one tanh over the whole vreg),
        # then cheap static lane slices of the results.
        sig = jax.nn.sigmoid(gates)
        tnh = jnp.tanh(gates)
        i_g = sig[:, 0 * H:1 * H]
        f_g = sig[:, 1 * H:2 * H]
        g_g = tnh[:, 2 * H:3 * H]
        o_g = sig[:, 3 * H:4 * H]
        c_new = f_g * c + i_g * g_g
        h_new = o_g * jnp.tanh(c_new)
        hall_ref[pl.ds(t, 1), :] = h_new                            # VMEM scratch, not HBM
        return (h_new, c_new)

    h0 = jnp.zeros((1, H), jnp.float32)
    c0 = jnp.zeros((1, H), jnp.float32)
    # Tiny fixed trip count -> fully unroll so the LLO scheduler can overlap steps.
    lax.fori_loop(0, T, step, (h0, c0), unroll=True)

    # ---- Batched hidden2tag + log_softmax, single lane-dense store. ----
    tag = (jnp.dot(hall_ref[...], wtag_ref[...],
                   preferred_element_type=jnp.float32)
           + btag_ref[...])                                         # (T, TagPad)
    m = jnp.max(tag, axis=-1, keepdims=True)
    lse = m + jnp.log(jnp.sum(jnp.exp(tag - m), axis=-1, keepdims=True))
    out_ref[...] = tag - lse


def lstm_tagger_forward(sentence, params):
    """sentence: (T,) int32 ids.  Returns (T, tagset) log-softmax scores."""
    emb_table = params["emb"]          # (V, E)
    wih_t = params["wih_t"]            # (E, 4H)
    whh_t = params["whh_t"]            # (H, 4H)
    bias = params["bias"]              # (1, 4H)
    wtag_p = params["wtag_t_pad"]      # (H, TagPad)  zero-padded
    btag_p = params["btag_pad"]        # (1, TagPad)  -1e30 in pad columns
    tagset = params["tagset"]

    embeds = emb_table[sentence]       # (T, E)  -- glue: embedding gather
    T = embeds.shape[0]
    H = whh_t.shape[0]
    tag_pad = wtag_p.shape[1]

    full = lambda shape: pl.BlockSpec(shape, lambda: tuple(0 for _ in shape))
    out_padded = pl.pallas_call(
        lstm_tagger_kernel,
        out_shape=jax.ShapeDtypeStruct((T, tag_pad), jnp.float32),
        in_specs=[
            full(embeds.shape),
            full(wih_t.shape),
            full(whh_t.shape),
            full(bias.shape),
            full(wtag_p.shape),
            full(btag_p.shape),
        ],
        out_specs=full((T, tag_pad)),
        scratch_shapes=[
            pltpu.VMEM((T, 4 * H), jnp.float32),   # xw: hoisted input projection
            pltpu.VMEM((T, H), jnp.float32),       # h_all: hidden states per step
        ],
    )(embeds, wih_t, whh_t, bias, wtag_p, btag_p)
    return out_padded[:, :tagset]


def init_params(key, embedding_dim, hidden_dim, vocab_size, tagset_size):
    ks = jax.random.split(key, 7)
    k_lstm = 1.0 / jnp.sqrt(hidden_dim)
    k_lin = 1.0 / jnp.sqrt(hidden_dim)
    emb = jax.random.normal(ks[0], (vocab_size, embedding_dim), jnp.float32)
    w_ih = jax.random.uniform(ks[1], (4 * hidden_dim, embedding_dim), jnp.float32, -k_lstm, k_lstm)
    w_hh = jax.random.uniform(ks[2], (4 * hidden_dim, hidden_dim), jnp.float32, -k_lstm, k_lstm)
    b_ih = jax.random.uniform(ks[3], (4 * hidden_dim,), jnp.float32, -k_lstm, k_lstm)
    b_hh = jax.random.uniform(ks[4], (4 * hidden_dim,), jnp.float32, -k_lstm, k_lstm)
    w_tag = jax.random.uniform(ks[5], (tagset_size, hidden_dim), jnp.float32, -k_lin, k_lin)
    b_tag = jax.random.uniform(ks[6], (tagset_size,), jnp.float32, -k_lin, k_lin)

    # Lane-dense tag projection: pad tag dim to a multiple of 128 once at init time.
    tag_pad = 128 * pl.cdiv(tagset_size, 128)
    wtag_t = w_tag.T                                                   # (H, Tag)
    wtag_t_pad = jnp.zeros((hidden_dim, tag_pad), jnp.float32).at[:, :tagset_size].set(wtag_t)
    btag_pad = jnp.full((1, tag_pad), -1e30, jnp.float32).at[0, :tagset_size].set(b_tag)

    return {
        "emb": emb,
        "wih_t": w_ih.T,                       # (E, 4H)
        "whh_t": w_hh.T,                       # (H, 4H)
        "bias": (b_ih + b_hh)[None, :],        # (1, 4H)
        "wtag_t_pad": wtag_t_pad,              # (H, TagPad)
        "btag_pad": btag_pad,                  # (1, TagPad)
        "tagset": tagset_size,
    }


if __name__ == "__main__":
    EMBEDDING_DIM = 32
    HIDDEN_DIM = 32
    VOCAB_SIZE = 16
    TAGSET_SIZE = 8
    SEQ_LEN = 8

    key = jax.random.PRNGKey(0)
    k_param, k_sent = jax.random.split(key)
    params = init_params(k_param, EMBEDDING_DIM, HIDDEN_DIM, VOCAB_SIZE, TAGSET_SIZE)
    sentence = jax.random.randint(k_sent, (SEQ_LEN,), 0, VOCAB_SIZE, dtype=jnp.int32)

    scores = lstm_tagger_forward(sentence, params)
    jax.block_until_ready(scores)
    assert scores.shape == (SEQ_LEN, TAGSET_SIZE)
    assert bool(jnp.all(jnp.isfinite(scores)))
    print("KERNEL_OK")
</pallas_src>

<mosaic_0001>
module attributes {stable_mosaic.version = 11 : i64} {
  func.func @lstm_tagger_kernel(%arg0: memref<8x32xf32, #tpu.memory_space<vmem>>, %arg1: memref<32x128xf32, #tpu.memory_space<vmem>>, %arg2: memref<32x128xf32, #tpu.memory_space<vmem>>, %arg3: memref<1x128xf32, #tpu.memory_space<vmem>>, %arg4: memref<32x128xf32, #tpu.memory_space<vmem>>, %arg5: memref<1x128xf32, #tpu.memory_space<vmem>>, %arg6: memref<8x128xf32, #tpu.memory_space<vmem>>, %arg7: memref<8x128xf32, #tpu.memory_space<vmem>>, %arg8: memref<8x32xf32, #tpu.memory_space<vmem>>) attributes {dimension_semantics = [], scalar_prefetch = 0 : i64, scratch_operands = 2 : i64, tpu.core_type = #tpu.core_type<tc>} {
    %c0 = arith.constant 0 : index
    %c0_0 = arith.constant 0 : index
    %0 = vector.load %arg0[%c0, %c0_0] : memref<8x32xf32, #tpu.memory_space<vmem>>, vector<8x32xf32>
    %c0_1 = arith.constant 0 : index
    %c0_2 = arith.constant 0 : index
    %1 = vector.load %arg1[%c0_1, %c0_2] : memref<32x128xf32, #tpu.memory_space<vmem>>, vector<32x128xf32>
    %cst = arith.constant dense<0.000000e+00> : vector<8x128xf32>
    %2 = tpu.matmul %0, %1, %cst {dimension_numbers = #tpu.dot_dimension_numbers<[1], [0], [0], [1], [0, 0, 1, 1], [], []>} : vector<8x32xf32>, vector<32x128xf32>, vector<8x128xf32> -> vector<8x128xf32>
    %c0_3 = arith.constant 0 : index
    %c0_4 = arith.constant 0 : index
    %3 = vector.load %arg3[%c0_3, %c0_4] : memref<1x128xf32, #tpu.memory_space<vmem>>, vector<1x128xf32>
    %4 = vector.broadcast %3 : vector<1x128xf32> to vector<8x128xf32>
    %5 = arith.addf %2, %4 : vector<8x128xf32>
    %c0_5 = arith.constant 0 : index
    %c0_6 = arith.constant 0 : index
    %6 = vector.load %arg7[%c0_5, %c0_6] : memref<8x128xf32, #tpu.memory_space<vmem>>, vector<8x128xf32>
    tpu.vector_store %arg7[%c0_5, %c0_6], %5 {strides = array<i32>} : memref<8x128xf32, #tpu.memory_space<vmem>>, vector<8x128xf32>,
    %c0_7 = arith.constant 0 : index
    %c0_8 = arith.constant 0 : index
    %7 = vector.load %arg2[%c0_7, %c0_8] : memref<32x128xf32, #tpu.memory_space<vmem>>, vector<32x128xf32>
    %cst_9 = arith.constant 0.000000e+00 : f32
    %8 = vector.broadcast %cst_9 : f32 to vector<1x32xf32>
    %cst_10 = arith.constant 0.000000e+00 : f32
    %9 = vector.broadcast %cst_10 : f32 to vector<1x32xf32>
    %c0_i32 = arith.constant 0 : i32
    %10 = arith.index_cast %c0_i32 : i32 to index
    %c0_11 = arith.constant 0 : index
    %11 = vector.load %arg7[%10, %c0_11] : memref<8x128xf32, #tpu.memory_space<vmem>>, vector<1x128xf32>
    %cst_12 = arith.constant dense<0.000000e+00> : vector<1x128xf32>
    %12 = tpu.matmul %8, %7, %cst_12 {dimension_numbers = #tpu.dot_dimension_numbers<[1], [0], [0], [1], [0, 0, 1, 1], [], []>} : vector<1x32xf32>, vector<32x128xf32>, vector<1x128xf32> -> vector<1x128xf32>
    %13 = arith.addf %11, %12 : vector<1x128xf32>
    %14 = arith.negf %13 : vector<1x128xf32>
    %15 = math.exp %14 : vector<1x128xf32>
    %cst_13 = arith.constant 1.000000e+00 : f32
    %16 = vector.broadcast %cst_13 : f32 to vector<1x128xf32>
    %17 = arith.addf %16, %15 : vector<1x128xf32>
    %18 = arith.divf %16, %17 : vector<1x128xf32>
    %19 = math.tanh %13 : vector<1x128xf32>
    %20 = vector.extract_strided_slice %18 {offsets = [0, 0], sizes = [1, 32], strides = [1, 1]} : vector<1x128xf32> to vector<1x32xf32>
    %21 = vector.extract_strided_slice %18 {offsets = [0, 32], sizes = [1, 32], strides = [1, 1]} : vector<1x128xf32> to vector<1x32xf32>
    %22 = vector.extract_strided_slice %19 {offsets = [0, 64], sizes = [1, 32], strides = [1, 1]} : vector<1x128xf32> to vector<1x32xf32>
    %23 = vector.extract_strided_slice %18 {offsets = [0, 96], sizes = [1, 32], strides = [1, 1]} : vector<1x128xf32> to vector<1x32xf32>
    %24 = arith.mulf %21, %9 : vector<1x32xf32>
    %25 = arith.mulf %20, %22 : vector<1x32xf32>
    %26 = arith.addf %24, %25 : vector<1x32xf32>
    %27 = math.tanh %26 : vector<1x32xf32>
    %28 = arith.mulf %23, %27 : vector<1x32xf32>
    %29 = arith.index_cast %c0_i32 : i32 to index
    %c0_14 = arith.constant 0 : index
    %30 = vector.load %arg8[%29, %c0_14] : memref<8x32xf32, #tpu.memory_space<vmem>>, vector<1x32xf32>
    tpu.vector_store %arg8[%29, %c0_14], %28 {strides = array<i32>} : memref<8x32xf32, #tpu.memory_space<vmem>>, vector<1x32xf32>,
    %c1_i32 = arith.constant 1 : i32
    %31 = arith.index_cast %c1_i32 : i32 to index
    %c0_15 = arith.constant 0 : index
    %32 = vector.load %arg7[%31, %c0_15] : memref<8x128xf32, #tpu.memory_space<vmem>>, vector<1x128xf32>
    %cst_16 = arith.constant dense<0.000000e+00> : vector<1x128xf32>
    %33 = tpu.matmul %28, %7, %cst_16 {dimension_numbers = #tpu.dot_dimension_numbers<[1], [0], [0], [1], [0, 0, 1, 1], [], []>} : vector<1x32xf32>, vector<32x128xf32>, vector<1x128xf32> -> vector<1x128xf32>
    %34 = arith.addf %32, %33 : vector<1x128xf32>
    %35 = arith.negf %34 : vector<1x128xf32>
    %36 = math.exp %35 : vector<1x128xf32>
    %cst_17 = arith.constant 1.000000e+00 : f32
    %37 = vector.broadcast %cst_17 : f32 to vector<1x128xf32>
    %38 = arith.addf %37, %36 : vector<1x128xf32>
    %39 = arith.divf %37, %38 : vector<1x128xf32>
    %40 = math.tanh %34 : vector<1x128xf32>
    %41 = vector.extract_strided_slice %39 {offsets = [0, 0], sizes = [1, 32], strides = [1, 1]} : vector<1x128xf32> to vector<1x32xf32>
    %42 = vector.extract_strided_slice %39 {offsets = [0, 32], sizes = [1, 32], strides = [1, 1]} : vector<1x128xf32> to vector<1x32xf32>
    %43 = vector.extract_strided_slice %40 {offsets = [0, 64], sizes = [1, 32], strides = [1, 1]} : vector<1x128xf32> to vector<1x32xf32>
    %44 = vector.extract_strided_slice %39 {offsets = [0, 96], sizes = [1, 32], strides = [1, 1]} : vector<1x128xf32> to vector<1x32xf32>
    %45 = arith.mulf %42, %26 : vector<1x32xf32>
    %46 = arith.mulf %41, %43 : vector<1x32xf32>
    %47 = arith.addf %45, %46 : vector<1x32xf32>
    %48 = math.tanh %47 : vector<1x32xf32>
    %49 = arith.mulf %44, %48 : vector<1x32xf32>
    %50 = arith.index_cast %c1_i32 : i32 to index
    %c0_18 = arith.constant 0 : index
    %51 = vector.load %arg8[%50, %c0_18] : memref<8x32xf32, #tpu.memory_space<vmem>>, vector<1x32xf32>
    tpu.vector_store %arg8[%50, %c0_18], %49 {strides = array<i32>} : memref<8x32xf32, #tpu.memory_space<vmem>>, vector<1x32xf32>,
    %c2_i32 = arith.constant 2 : i32
    %52 = arith.index_cast %c2_i32 : i32 to index
    %c0_19 = arith.constant 0 : index
    %53 = vector.load %arg7[%52, %c0_19] : memref<8x128xf32, #tpu.memory_space<vmem>>, vector<1x128xf32>
    %cst_20 = arith.constant dense<0.000000e+00> : vector<1x128xf32>
    %54 = tpu.matmul %49, %7, %cst_20 {dimension_numbers = #tpu.dot_dimension_numbers<[1], [0], [0], [1], [0, 0, 1, 1], [], []>} : vector<1x32xf32>, vector<32x128xf32>, vector<1x128xf32> -> vector<1x128xf32>
    %55 = arith.addf %53, %54 : vector<1x128xf32>
    %56 = arith.negf %55 : vector<1x128xf32>
    %57 = math.exp %56 : vector<1x128xf32>
    %cst_21 = arith.constant 1.000000e+00 : f32
    %58 = vector.broadcast %cst_21 : f32 to vector<1x128xf32>
    %59 = arith.addf %58, %57 : vector<1x128xf32>
    %60 = arith.divf %58, %59 : vector<1x128xf32>
    %61 = math.tanh %55 : vector<1x128xf32>
    %62 = vector.extract_strided_slice %60 {offsets = [0, 0], sizes = [1, 32], strides = [1, 1]} : vector<1x128xf32> to vector<1x32xf32>
    %63 = vector.extract_strided_slice %60 {offsets = [0, 32], sizes = [1, 32], strides = [1, 1]} : vector<1x128xf32> to vector<1x32xf32>
    %64 = vector.extract_strided_slice %61 {offsets = [0, 64], sizes = [1, 32], strides = [1, 1]} : vector<1x128xf32> to vector<1x32xf32>
    %65 = vector.extract_strided_slice %60 {offsets = [0, 96], sizes = [1, 32], strides = [1, 1]} : vector<1x128xf32> to vector<1x32xf32>
    %66 = arith.mulf %63, %47 : vector<1x32xf32>
    %67 = arith.mulf %62, %64 : vector<1x32xf32>
    %68 = arith.addf %66, %67 : vector<1x32xf32>
    %69 = math.tanh %68 : vector<1x32xf32>
    %70 = arith.mulf %65, %69 : vector<1x32xf32>
    %71 = arith.index_cast %c2_i32 : i32 to index
    %c0_22 = arith.constant 0 : index
    %72 = vector.load %arg8[%71, %c0_22] : memref<8x32xf32, #tpu.memory_space<vmem>>, vector<1x32xf32>
    tpu.vector_store %arg8[%71, %c0_22], %70 {strides = array<i32>} : memref<8x32xf32, #tpu.memory_space<vmem>>, vector<1x32xf32>,
    %c3_i32 = arith.constant 3 : i32
    %73 = arith.index_cast %c3_i32 : i32 to index
    %c0_23 = arith.constant 0 : index
    %74 = vector.load %arg7[%73, %c0_23] : memref<8x128xf32, #tpu.memory_space<vmem>>, vector<1x128xf32>
    %cst_24 = arith.constant dense<0.000000e+00> : vector<1x128xf32>
    %75 = tpu.matmul %70, %7, %cst_24 {dimension_numbers = #tpu.dot_dimension_numbers<[1], [0], [0], [1], [0, 0, 1, 1], [], []>} : vector<1x32xf32>, vector<32x128xf32>, vector<1x128xf32> -> vector<1x128xf32>
    %76 = arith.addf %74, %75 : vector<1x128xf32>
    %77 = arith.negf %76 : vector<1x128xf32>
    %78 = math.exp %77 : vector<1x128xf32>
    %cst_25 = arith.constant 1.000000e+00 : f32
    %79 = vector.broadcast %cst_25 : f32 to vector<1x128xf32>
    %80 = arith.addf %79, %78 : vector<1x128xf32>
    %81 = arith.divf %79, %80 : vector<1x128xf32>
    %82 = math.tanh %76 : vector<1x128xf32>
    %83 = vector.extract_strided_slice %81 {offsets = [0, 0], sizes = [1, 32], strides = [1, 1]} : vector<1x128xf32> to vector<1x32xf32>
    %84 = vector.extract_strided_slice %81 {offsets = [0, 32], sizes = [1, 32], strides = [1, 1]} : vector<1x128xf32> to vector<1x32xf32>
    %85 = vector.extract_strided_slice %82 {offsets = [0, 64], sizes = [1, 32], strides = [1, 1]} : vector<1x128xf32> to vector<1x32xf32>
    %86 = vector.extract_strided_slice %81 {offsets = [0, 96], sizes = [1, 32], strides = [1, 1]} : vector<1x128xf32> to vector<1x32xf32>
    %87 = arith.mulf %84, %68 : vector<1x32xf32>
    %88 = arith.mulf %83, %85 : vector<1x32xf32>
    %89 = arith.addf %87, %88 : vector<1x32xf32>
    %90 = math.tanh %89 : vector<1x32xf32>
    %91 = arith.mulf %86, %90 : vector<1x32xf32>
    %92 = arith.index_cast %c3_i32 : i32 to index
    %c0_26 = arith.constant 0 : index
    %93 = vector.load %arg8[%92, %c0_26] : memref<8x32xf32, #tpu.memory_space<vmem>>, vector<1x32xf32>
    tpu.vector_store %arg8[%92, %c0_26], %91 {strides = array<i32>} : memref<8x32xf32, #tpu.memory_space<vmem>>, vector<1x32xf32>,
    %c4_i32 = arith.constant 4 : i32
    %94 = arith.index_cast %c4_i32 : i32 to index
    %c0_27 = arith.constant 0 : index
    %95 = vector.load %arg7[%94, %c0_27] : memref<8x128xf32, #tpu.memory_space<vmem>>, vector<1x128xf32>
    %cst_28 = arith.constant dense<0.000000e+00> : vector<1x128xf32>
    %96 = tpu.matmul %91, %7, %cst_28 {dimension_numbers = #tpu.dot_dimension_numbers<[1], [0], [0], [1], [0, 0, 1, 1], [], []>} : vector<1x32xf32>, vector<32x128xf32>, vector<1x128xf32> -> vector<1x128xf32>
    %97 = arith.addf %95, %96 : vector<1x128xf32>
    %98 = arith.negf %97 : vector<1x128xf32>
    %99 = math.exp %98 : vector<1x128xf32>
    %cst_29 = arith.constant 1.000000e+00 : f32
    %100 = vector.broadcast %cst_29 : f32 to vector<1x128xf32>
    %101 = arith.addf %100, %99 : vector<1x128xf32>
    %102 = arith.divf %100, %101 : vector<1x128xf32>
    %103 = math.tanh %97 : vector<1x128xf32>
    %104 = vector.extract_strided_slice %102 {offsets = [0, 0], sizes = [1, 32], strides = [1, 1]} : vector<1x128xf32> to vector<1x32xf32>
    %105 = vector.extract_strided_slice %102 {offsets = [0, 32], sizes = [1, 32], strides = [1, 1]} : vector<1x128xf32> to vector<1x32xf32>
    %106 = vector.extract_strided_slice %103 {offsets = [0, 64], sizes = [1, 32], strides = [1, 1]} : vector<1x128xf32> to vector<1x32xf32>
    %107 = vector.extract_strided_slice %102 {offsets = [0, 96], sizes = [1, 32], strides = [1, 1]} : vector<1x128xf32> to vector<1x32xf32>
    %108 = arith.mulf %105, %89 : vector<1x32xf32>
    %109 = arith.mulf %104, %106 : vector<1x32xf32>
    %110 = arith.addf %108, %109 : vector<1x32xf32>
    %111 = math.tanh %110 : vector<1x32xf32>
    %112 = arith.mulf %107, %111 : vector<1x32xf32>
    %113 = arith.index_cast %c4_i32 : i32 to index
    %c0_30 = arith.constant 0 : index
    %114 = vector.load %arg8[%113, %c0_30] : memref<8x32xf32, #tpu.memory_space<vmem>>, vector<1x32xf32>
    tpu.vector_store %arg8[%113, %c0_30], %112 {strides = array<i32>} : memref<8x32xf32, #tpu.memory_space<vmem>>, vector<1x32xf32>,
    %c5_i32 = arith.constant 5 : i32
    %115 = arith.index_cast %c5_i32 : i32 to index
    %c0_31 = arith.constant 0 : index
    %116 = vector.load %arg7[%115, %c0_31] : memref<8x128xf32, #tpu.memory_space<vmem>>, vector<1x128xf32>
    %cst_32 = arith.constant dense<0.000000e+00> : vector<1x128xf32>
    %117 = tpu.matmul %112, %7, %cst_32 {dimension_numbers = #tpu.dot_dimension_numbers<[1], [0], [0], [1], [0, 0, 1, 1], [], []>} : vector<1x32xf32>, vector<32x128xf32>, vector<1x128xf32> -> vector<1x128xf32>
    %118 = arith.addf %116, %117 : vector<1x128xf32>
    %119 = arith.negf %118 : vector<1x128xf32>
    %120 = math.exp %119 : vector<1x128xf32>
    %cst_33 = arith.constant 1.000000e+00 : f32
    %121 = vector.broadcast %cst_33 : f32 to vector<1x128xf32>
    %122 = arith.addf %121, %120 : vector<1x128xf32>
    %123 = arith.divf %121, %122 : vector<1x128xf32>
    %124 = math.tanh %118 : vector<1x128xf32>
    %125 = vector.extract_strided_slice %123 {offsets = [0, 0], sizes = [1, 32], strides = [1, 1]} : vector<1x128xf32> to vector<1x32xf32>
    %126 = vector.extract_strided_slice %123 {offsets = [0, 32], sizes = [1, 32], strides = [1, 1]} : vector<1x128xf32> to vector<1x32xf32>
    %127 = vector.extract_strided_slice %124 {offsets = [0, 64], sizes = [1, 32], strides = [1, 1]} : vector<1x128xf32> to vector<1x32xf32>
    %128 = vector.extract_strided_slice %123 {offsets = [0, 96], sizes = [1, 32], strides = [1, 1]} : vector<1x128xf32> to vector<1x32xf32>
    %129 = arith.mulf %126, %110 : vector<1x32xf32>
    %130 = arith.mulf %125, %127 : vector<1x32xf32>
    %131 = arith.addf %129, %130 : vector<1x32xf32>
    %132 = math.tanh %131 : vector<1x32xf32>
    %133 = arith.mulf %128, %132 : vector<1x32xf32>
    %134 = arith.index_cast %c5_i32 : i32 to index
    %c0_34 = arith.constant 0 : index
    %135 = vector.load %arg8[%134, %c0_34] : memref<8x32xf32, #tpu.memory_space<vmem>>, vector<1x32xf32>
    tpu.vector_store %arg8[%134, %c0_34], %133 {strides = array<i32>} : memref<8x32xf32, #tpu.memory_space<vmem>>, vector<1x32xf32>,
    %c6_i32 = arith.constant 6 : i32
    %136 = arith.index_cast %c6_i32 : i32 to index
    %c0_35 = arith.constant 0 : index
    %137 = vector.load %arg7[%136, %c0_35] : memref<8x128xf32, #tpu.memory_space<vmem>>, vector<1x128xf32>
    %cst_36 = arith.constant dense<0.000000e+00> : vector<1x128xf32>
    %138 = tpu.matmul %133, %7, %cst_36 {dimension_numbers = #tpu.dot_dimension_numbers<[1], [0], [0], [1], [0, 0, 1, 1], [], []>} : vector<1x32xf32>, vector<32x128xf32>, vector<1x128xf32> -> vector<1x128xf32>
    %139 = arith.addf %137, %138 : vector<1x128xf32>
    %140 = arith.negf %139 : vector<1x128xf32>
    %141 = math.exp %140 : vector<1x128xf32>
    %cst_37 = arith.constant 1.000000e+00 : f32
    %142 = vector.broadcast %cst_37 : f32 to vector<1x128xf32>
    %143 = arith.addf %142, %141 : vector<1x128xf32>
    %144 = arith.divf %142, %143 : vector<1x128xf32>
    %145 = math.tanh %139 : vector<1x128xf32>
    %146 = vector.extract_strided_slice %144 {offsets = [0, 0], sizes = [1, 32], strides = [1, 1]} : vector<1x128xf32> to vector<1x32xf32>
    %147 = vector.extract_strided_slice %144 {offsets = [0, 32], sizes = [1, 32], strides = [1, 1]} : vector<1x128xf32> to vector<1x32xf32>
    %148 = vector.extract_strided_slice %145 {offsets = [0, 64], sizes = [1, 32], strides = [1, 1]} : vector<1x128xf32> to vector<1x32xf32>
    %149 = vector.extract_strided_slice %144 {offsets = [0, 96], sizes = [1, 32], strides = [1, 1]} : vector<1x128xf32> to vector<1x32xf32>
    %150 = arith.mulf %147, %131 : vector<1x32xf32>
    %151 = arith.mulf %146, %148 : vector<1x32xf32>
    %152 = arith.addf %150, %151 : vector<1x32xf32>
    %153 = math.tanh %152 : vector<1x32xf32>
    %154 = arith.mulf %149, %153 : vector<1x32xf32>
    %155 = arith.index_cast %c6_i32 : i32 to index
    %c0_38 = arith.constant 0 : index
    %156 = vector.load %arg8[%155, %c0_38] : memref<8x32xf32, #tpu.memory_space<vmem>>, vector<1x32xf32>
    tpu.vector_store %arg8[%155, %c0_38], %154 {strides = array<i32>} : memref<8x32xf32, #tpu.memory_space<vmem>>, vector<1x32xf32>,
    %c7_i32 = arith.constant 7 : i32
    %157 = arith.index_cast %c7_i32 : i32 to index
    %c0_39 = arith.constant 0 : index
    %158 = vector.load %arg7[%157, %c0_39] : memref<8x128xf32, #tpu.memory_space<vmem>>, vector<1x128xf32>
    %cst_40 = arith.constant dense<0.000000e+00> : vector<1x128xf32>
    %159 = tpu.matmul %154, %7, %cst_40 {dimension_numbers = #tpu.dot_dimension_numbers<[1], [0], [0], [1], [0, 0, 1, 1], [], []>} : vector<1x32xf32>, vector<32x128xf32>, vector<1x128xf32> -> vector<1x128xf32>
    %160 = arith.addf %158, %159 : vector<1x128xf32>
    %161 = arith.negf %160 : vector<1x128xf32>
    %162 = math.exp %161 : vector<1x128xf32>
    %cst_41 = arith.constant 1.000000e+00 : f32
    %163 = vector.broadcast %cst_41 : f32 to vector<1x128xf32>
    %164 = arith.addf %163, %162 : vector<1x128xf32>
    %165 = arith.divf %163, %164 : vector<1x128xf32>
    %166 = math.tanh %160 : vector<1x128xf32>
    %167 = vector.extract_strided_slice %165 {offsets = [0, 0], sizes = [1, 32], strides = [1, 1]} : vector<1x128xf32> to vector<1x32xf32>
    %168 = vector.extract_strided_slice %165 {offsets = [0, 32], sizes = [1, 32], strides = [1, 1]} : vector<1x128xf32> to vector<1x32xf32>
    %169 = vector.extract_strided_slice %166 {offsets = [0, 64], sizes = [1, 32], strides = [1, 1]} : vector<1x128xf32> to vector<1x32xf32>
    %170 = vector.extract_strided_slice %165 {offsets = [0, 96], sizes = [1, 32], strides = [1, 1]} : vector<1x128xf32> to vector<1x32xf32>
    %171 = arith.mulf %168, %152 : vector<1x32xf32>
    %172 = arith.mulf %167, %169 : vector<1x32xf32>
    %173 = arith.addf %171, %172 : vector<1x32xf32>
    %174 = math.tanh %173 : vector<1x32xf32>
    %175 = arith.mulf %170, %174 : vector<1x32xf32>
    %176 = arith.index_cast %c7_i32 : i32 to index
    %c0_42 = arith.constant 0 : index
    %177 = vector.load %arg8[%176, %c0_42] : memref<8x32xf32, #tpu.memory_space<vmem>>, vector<1x32xf32>
    tpu.vector_store %arg8[%176, %c0_42], %175 {strides = array<i32>} : memref<8x32xf32, #tpu.memory_space<vmem>>, vector<1x32xf32>,
    %c8_i32 = arith.constant 8 : i32
    %c0_43 = arith.constant 0 : index
    %c0_44 = arith.constant 0 : index
    %178 = vector.load %arg8[%c0_43, %c0_44] : memref<8x32xf32, #tpu.memory_space<vmem>>, vector<8x32xf32>
    %c0_45 = arith.constant 0 : index
    %c0_46 = arith.constant 0 : index
    %179 = vector.load %arg4[%c0_45, %c0_46] : memref<32x128xf32, #tpu.memory_space<vmem>>, vector<32x128xf32>
    %cst_47 = arith.constant dense<0.000000e+00> : vector<8x128xf32>
    %180 = tpu.matmul %178, %179, %cst_47 {dimension_numbers = #tpu.dot_dimension_numbers<[1], [0], [0], [1], [0, 0, 1, 1], [], []>} : vector<8x32xf32>, vector<32x128xf32>, vector<8x128xf32> -> vector<8x128xf32>
    %c0_48 = arith.constant 0 : index
    %c0_49 = arith.constant 0 : index
    %181 = vector.load %arg5[%c0_48, %c0_49] : memref<1x128xf32, #tpu.memory_space<vmem>>, vector<1x128xf32>
    %182 = vector.broadcast %181 : vector<1x128xf32> to vector<8x128xf32>
    %183 = arith.addf %180, %182 : vector<8x128xf32>
    %cst_50 = arith.constant dense<0xFF800000> : vector<8xf32>
    %184 = vector.multi_reduction <maximumf>, %183, %cst_50 [1] : vector<8x128xf32> to vector<8xf32>
    %185 = vector.shape_cast %184 : vector<8xf32> to vector<8x1xf32>
    %186 = vector.broadcast %185 : vector<8x1xf32> to vector<8x128xf32>
    %187 = arith.subf %183, %186 : vector<8x128xf32>
    %188 = math.exp %187 : vector<8x128xf32>
    %cst_51 = arith.constant dense<0.000000e+00> : vector<8xf32>
    %189 = vector.multi_reduction <add>, %188, %cst_51 [1] : vector<8x128xf32> to vector<8xf32>
    %190 = vector.shape_cast %189 : vector<8xf32> to vector<8x1xf32>
    %191 = math.log %190 : vector<8x1xf32>
    %192 = arith.addf %185, %191 : vector<8x1xf32>
    %193 = vector.broadcast %192 : vector<8x1xf32> to vector<8x128xf32>
    %194 = arith.subf %183, %193 : vector<8x128xf32>
    %c0_52 = arith.constant 0 : index
    %c0_53 = arith.constant 0 : index
    %195 = vector.load %arg6[%c0_52, %c0_53] : memref<8x128xf32, #tpu.memory_space<vmem>>, vector<8x128xf32>
    tpu.vector_store %arg6[%c0_52, %c0_53], %194 {strides = array<i32>} : memref<8x128xf32, #tpu.memory_space<vmem>>, vector<8x128xf32>,
    return
  }
}

</mosaic_0001>

<bundles_post_ra>
// kernel: tpu_custom_call.1
= control target key start
LH: loop header
LB: loop body
LE: loop exit
PB: predicated region body
PF: predicated region fallthrough
CT: control target
= control target key end

     0   :  { %11 = vsyncpa [#allocation5], 0  ;;  %s1777_s0 = inlined_call_operand.hbm [shape: f32[8,32], index: 0, kind: input, shape index: {}]   ;;  %s1778_s1 = inlined_call_operand.hbm [shape: f32[32,128], index: 1, kind: input, shape index: {}]   ;;  %s1779_s2 = inlined_call_operand.hbm [shape: f32[32,128], index: 2, kind: input, shape index: {}]   ;;  %s1780_s3 = inlined_call_operand.vmem [shape: f32[1,128], index: 3, kind: input, shape index: {}]   ;;  %s1781_s4 = inlined_call_operand.hbm [shape: f32[32,128], index: 4, kind: input, shape index: {}]   ;;  %s1782_s5 = inlined_call_operand.vmem [shape: f32[1,128], index: 5, kind: input, shape index: {}]   ;;  %s1783_s6 = inlined_call_operand.hbm [shape: f32[8,128], index: 6, kind: output, shape index: {}]  }
   0x1   :  { %12 = vsyncpa [#allocation8], 0 }
   0x2   :  { %13 = vsyncpa [#allocation11], 0 }
   0x3   :  { %14 = vsyncpa [#allocation6], 0  ;;  %s1545_s21 = smov [#allocation7]   ;;  %s1427_s25 = scalar_lea.hbm %s1778_s1, 512 }
   0x4   :  { %s30_s22 = sshll.u32 %s1545_s21, 4  ;;  %p1428_p0 = scmp.ne.s32.totalorder %s1778_s1, %s1427_s25  ;;  %s31_s22 = int_to_ptr.vmem [resolvable:$true] %s30_s22 }
   0x5   :  { %p1431_p1 = scmp.lt.u32.totalorder %s1427_s25, %s1778_s1 }
   0x7   :  { %p1433_p2 = pnand %p1431_p1, %p1428_p0 }
   0x9   :  { %1436 = shalt.err (!%p1433_p2)
}
   0xa   :  { %s1437_s30 = scalar_lea.vmem %s31_s22, 512  ;;  %p1442_p4 = scmp.lt.s32.totalorder %s31_s22, %s31_s22 }
   0xb   :  { %p1438_p3 = scmp.ne.s32.totalorder %s31_s22, %s1437_s30  ;;  %p1443_p5 = scmp.lt.s32.totalorder %s1437_s30, %s1437_s30 }
   0xd   :  { %p1444_p6 = por %p1443_p5, %p1442_p4 }
   0xf   :  { %p1445_p7 = pnand %p1444_p6, %p1438_p3 }
  0x11   :  { %1448 = shalt.err (!%p1445_p7)
}
  0x12   :  { %s1546_s7 = smov 128   ;;  %s1547_s8 = smov 8  }
  0x13   :  { %36 = dma.hbm_to_vmem [thread:$0]  %s1778_s1, 512, %s31_s22, [#allocation8], %s1546_s7, %s1546_s7, %s1547_s8  }
  0x14   :  { %s1548_s11 = smov [#allocation4]   ;;  %s1549_s13 = smov [#allocation9]  }
  0x15   :  { %s21_s12 = sshll.u32 %s1548_s11, 4  ;;  %s42_s14 = sshll.u32 %s1549_s13, 4  ;;  %s22_s12 = int_to_ptr.vmem [resolvable:$true] %s21_s12  ;;  %s43_s14 = int_to_ptr.vmem [resolvable:$true] %s42_s14 }
  0x16   :  { %s1449_s17 = scalar_lea.hbm %s1777_s0, 128 }
  0x17   :  { %p1450_p8 = scmp.ne.s32.totalorder %s1777_s0, %s1449_s17  ;;  %p1453_p9 = scmp.lt.u32.totalorder %s1449_s17, %s1777_s0 }
  0x19   :  { %p1455_p10 = pnand %p1453_p9, %p1450_p8 }
  0x1b   :  { %1458 = shalt.err (!%p1455_p10)
}
  0x1c   :  { %s1459_s1 = scalar_lea.vmem %s22_s12, 128  ;;  %p1464_p12 = scmp.lt.s32.totalorder %s22_s12, %s22_s12 }
  0x1d   :  { %p1460_p11 = scmp.ne.s32.totalorder %s22_s12, %s1459_s1  ;;  %p1465_p13 = scmp.lt.s32.totalorder %s1459_s1, %s1459_s1 }
  0x1f   :  { %p1466_p0 = por %p1465_p13, %p1464_p12 }
  0x21   :  { %p1467_p1 = pnand %p1466_p0, %p1460_p11 }
  0x23   :  { %1470 = shalt.err (!%p1467_p1)
}
  0x24   :  { %24 = dma.hbm_to_vmem [thread:$0]  %s1777_s0, 128, %s22_s12, [#allocation5]  }
  0x25   :  { %s1471_s26 = scalar_lea.hbm %s1779_s2, 512 }
  0x26   :  { %p1472_p2 = scmp.ne.s32.totalorder %s1779_s2, %s1471_s26  ;;  %p1475_p3 = scmp.lt.u32.totalorder %s1471_s26, %s1779_s2 }
  0x28   :  { %p1477_p4 = pnand %p1475_p3, %p1472_p2 }
  0x2a   :  { %1480 = shalt.err (!%p1477_p4)
}
  0x2b   :  { %s1481_s9 = scalar_lea.vmem %s43_s14, 512  ;;  %p1486_p6 = scmp.lt.s32.totalorder %s43_s14, %s43_s14 }
  0x2c   :  { %p1482_p5 = scmp.ne.s32.totalorder %s43_s14, %s1481_s9  ;;  %p1487_p7 = scmp.lt.s32.totalorder %s1481_s9, %s1481_s9 }
  0x2e   :  { %p1488_p8 = por %p1487_p7, %p1486_p6 }
  0x30   :  { %p1489_p9 = pnand %p1488_p8, %p1482_p5 }
  0x32   :  { %1492 = shalt.err (!%p1489_p9)
}
  0x33   :  { %48 = dma.hbm_to_vmem [thread:$0]  %s1779_s2, 512, %s43_s14, [#allocation8], %s1546_s7, %s1546_s7, %s1547_s8  }
  0x34   :  { %s1550_s11 = smov [#allocation10]   ;;  %s1493_s16 = scalar_lea.hbm %s1781_s4, 512 }
  0x35   :  { %s56_s12 = sshll.u32 %s1550_s11, 4  ;;  %p1494_p10 = scmp.ne.s32.totalorder %s1781_s4, %s1493_s16  ;;  %s57_s12 = int_to_ptr.vmem [resolvable:$true] %s56_s12 }
  0x36   :  { %p1497_p11 = scmp.lt.u32.totalorder %s1493_s16, %s1781_s4 }
  0x38   :  { %p1499_p12 = pnand %p1497_p11, %p1494_p10 }
  0x3a   :  { %1502 = shalt.err (!%p1499_p12)
}
  0x3b   :  { %s1503_s21 = scalar_lea.vmem %s57_s12, 512  ;;  %p1508_p0 = scmp.lt.s32.totalorder %s57_s12, %s57_s12 }
  0x3c   :  { %p1504_p13 = scmp.ne.s32.totalorder %s57_s12, %s1503_s21  ;;  %p1509_p1 = scmp.lt.s32.totalorder %s1503_s21, %s1503_s21 }
  0x3e   :  { %p1510_p2 = por %p1509_p1, %p1508_p0 }
  0x40   :  { %p1511_p3 = pnand %p1510_p2, %p1504_p13 }
  0x42   :  { %1514 = shalt.err (!%p1511_p3)
}
  0x43   :  { %62 = dma.hbm_to_vmem [thread:$0]  %s1781_s4, 512, %s57_s12, [#allocation11], %s1546_s7, %s1546_s7, %s1547_s8  }
  0x44   :  { %1537 = dma.done.wait [#allocation5], 128  }
  0x45   :  { %1538 = vsyncadd [#allocation5], 4294967168 }
  0x46   :  { %1539 = dma.done.wait [#allocation8], 1024  }
  0x47   :  { %1540 = vsyncadd [#allocation8], 4294966272 }
  0x48   :  { %1541 = dma.done.wait [#allocation11], 512  }
  0x49   :  { %1542 = vsyncadd [#allocation11], 4294966784  ;;  %v1551_v0 = vmov 0.0|0.0   ;;  %vm1552_vm0 = vmmov 0   ;;  %v1553_v1 = vmov 0.0   ;;  %v78_v2 = vld [vmem:[#allocation7] sm:$0xff] }
  0x4a   :  { %1287 = vmatprep.subr.bf16.mxu0 %v1551_v0  ;;  %1185 = vmatprep.mubr.msk.f32.mxu0 %vm1552_vm0, %v1553_v1  ;;  %v79_v3 = vld [vmem:[#allocation7 + $0x8] sm:$0xff]  ;;  %v80_v4 = vld [vmem:[#allocation7 + $0x10] sm:$0xff]  ;;  %v81_v6 = vld [vmem:[#allocation7 + $0x18] sm:$0xff]  ;;  %vm89_vm1 = vcmask 261120   ;;  %s1554_s8 = smov 64   ;;  %vm271_vm2 = vcmask 253952  }
  0x4b   :  { %1293 = vmatprep.subr.bf16.mxu1 %v1551_v0  ;;  %1196 = vmatprep.mubr.msk.f32.mxu1 %vm1552_vm0, %v1553_v1  ;;  %v1288_v5 = vpack.c.bf16 %v79_v3, %v78_v2  ;;  %v164_v7 = vld [vmem:[#allocation9] sm:$0xff]  ;;  %v165_v8 = vld [vmem:[#allocation9 + $0x8] sm:$0xff]  ;;  %v166_v9 = vld [vmem:[#allocation9 + $0x10] sm:$0xff]  ;;  %v1291_v11 = vpack.c.bf16 %v81_v6, %v80_v4  ;;  %s1556_s23 = smov [#allocation12]  }
  0x4c   :  { %v167_v10 = vld [vmem:[#allocation9 + $0x18] sm:$0xff]  ;;  %v1655_v12 = vpack.c.bf16 %v165_v8, %v164_v7  ;;  %v1108_v15 = vld [vmem:[%s1780_s3] ss:$0 sm:$0xff]  ;;  %s1555_s3 = smov 32   ;;  %s1097_s24 = sshll.u32 %s1556_s23, 4  ;;  %s1098_s24 = int_to_ptr.vmem [resolvable:$true] %s1097_s24 }
  0x4d   :  { %1289 = vmatpush3.bf16.msra.mxu0 %v1288_v5  ;;  %v1659_v13 = vpack.c.bf16 %v167_v10, %v166_v9  ;;  %v77_v14 = vld [vmem:[#allocation4] sm:$0xff]  ;;  %p1520_p5 = scmp.lt.s32.totalorder %s1098_s24, %s1098_s24 }
  0x4e   :  { %1290 = vmatprep.subr.bf16.mxu0 %v1551_v0  ;;  %1295 = vmatpush3.bf16.msra.mxu1 %v1655_v12 }
  0x4f   :  { %1296 = vmatprep.subr.bf16.mxu1 %v1551_v0 }
  0x51   :  { %1292 = vmatpush3.bf16.msra.mxu0 %v1291_v11 }
  0x52   :  { %1299 = vmatprep.subr.bf16.mxu0 %v1551_v0  ;;  %1298 = vmatpush3.bf16.msra.mxu1 %v1659_v13 }
  0x53   :  { %1305 = vmatprep.subr.bf16.mxu1 %v1551_v0 }
  0x54   :  { %1186 = vmatmul.mubr.msk.f32.vlgmr.msra.gmra.mrb[0].mxu0 %vm89_vm1, %v77_v14 }
  0x55   :  { %1301 = vmatpush3.bf16.msra.mxu0 %v1655_v12  ;;  %1207 = vmatprep.mubr.msk.f32.mxu0 %vm1552_vm0, %v1553_v1 }
  0x56   :  { %1197 = vmatmul.mubr.f32.vlgmr.msra.gmra.mrb[0].mxu1 %v1553_v1  ;;  %1302 = vmatprep.subr.bf16.mxu0 %v1551_v0 }
  0x57   :  { %1307 = vmatpush3.bf16.msra.mxu1 %v1655_v12  ;;  %1218 = vmatprep.mubr.msk.f32.mxu1 %vm1552_vm0, %v1553_v1 }
  0x58   :  { %1308 = vmatprep.subr.bf16.mxu1 %v1551_v0 }
  0x59   :  { %1304 = vmatpush3.bf16.msra.mxu0 %v1659_v13 }
  0x5a   :  { %1311 = vmatprep.subr.bf16.mxu0 %v1551_v0 }
  0x5b   :  { %1310 = vmatpush3.bf16.msra.mxu1 %v1659_v13 }
  0x5c   :  { %1317 = vmatprep.subr.bf16.mxu1 %v1551_v0 }
 0x127   :  { %v159_v16 = vpop.f32.mrb[0].mxu0 }
 0x128   :  { %v160_v17 = vadd.f32 %v1108_v15, %v159_v16  ;;  %v1187_v18 = vpop.f32.mrb[1].mxu0 }
 0x129   :  { %v238_v19 = vpop.f32.mrb[0].mxu1 }
 0x12a   :  { %163 = vst [vmem:[#allocation2] sm:$0xff] %v160_v17  ;;  %v1198_v20 = vpop.f32.mrb[1].mxu1 }
 0x131   :  { %v168_v21 = vld [vmem:[#allocation2] sm:$0x1]  ;;  %v273_v37 = vld [vmem:[#allocation2 + $0x1] sm:$0x1]  ;;  %v376_v55 = vld [vmem:[#allocation2 + $0x2] sm:$0x1] }
 0x132   :  { %v242_v22 = vadd.f32 %v238_v19, %v168_v21  ;;  %v479_v11 = vld [vmem:[#allocation2 + $0x3] sm:$0x1] }
 0x134   :  { %1359 = vtanh.f32 %v242_v22  ;;  %v1110_v24 = vmul.f32 -1.442695, %v242_v22 }
 0x136   :  { %1361 = vpow2.f32 %v1110_v24 }
 0x13e   :  { %v1360_v23 = vpop.eup %1359 }
 0x13f   :  { %252 = vrot.lane.b32.xlu0 %v1360_v23, %s1554_s8 }
 0x140   :  { %v1362_v25 = vpop.eup %1361 }
 0x141   :  { %v246_v26 = vadd.f32 1.0, %v1362_v25 }
 0x143   :  { %1363 = vrcp.f32 %v246_v26 }
 0x14d   :  { %v1364_v27 = vpop.eup %1363 }
 0x14e   :  { %v250_v30 = vmul.f32 0.0, %v1364_v27 }
 0x1b1   :  { %v253_v28 = vpop.permute.xlu0 %252 }
 0x1b2   :  { %v255_v29 = vmul.f32 %v1364_v27, %v253_v28 }
 0x1b4   :  { %257 = vrot.lane.b32.xlu0 %v255_v29, %s1555_s3 }
 0x226   :  { %v258_v31 = vpop.permute.xlu0 %257 }
 0x227   :  { %v260_v32 = vadd.f32 %v258_v31, %v250_v30  ;;  %v582_v31 = vld [vmem:[#allocation2 + $0x4] sm:$0x1] }
 0x229   :  { %1365 = vtanh.f32 %v260_v32 }
 0x233   :  { %v1366_v33 = vpop.eup %1365 }
 0x234   :  { %263 = vrot.lane.b32.xlu1 %v1366_v33, %s1554_s8 }
 0x2a6   :  { %v264_v34 = vpop.permute.xlu1 %263 }
 0x2a7   :  { %v266_v35 = vmul.f32 %v1364_v27, %v264_v34 }
 0x2a9   :  { %268 = vrot.lane.b32.xlu1 %v266_v35, %s1555_s3 }
 0x31b   :  { %v269_v36 = vpop.permute.xlu1 %268 }
 0x31c   :  { %272 = vst.msk [vmem:[#allocation3] sm:$0x1] %vm271_vm2, %v269_v36  ;;  %1208 = vmatmul.mubr.msk.f32.vlgmr.msra.gmra.mrb[2].mxu0 %vm89_vm1, %v269_v36 }
 0x31d   :  { %1313 = vmatpush3.bf16.msra.mxu0 %v1655_v12  ;;  %1229 = vmatprep.mubr.msk.f32.mxu0 %vm1552_vm0, %v1553_v1 }
 0x31e   :  { %1314 = vmatprep.subr.bf16.mxu0 %v1551_v0 }
 0x321   :  { %1316 = vmatpush3.bf16.msra.mxu0 %v1659_v13 }
 0x322   :  { %1323 = vmatprep.subr.bf16.mxu0 %v1551_v0 }
 0x3ef   :  { %v342_v38 = vpop.f32.mrb[2].mxu0 }
 0x3f0   :  { %v346_v39 = vadd.f32 %v342_v38, %v273_v37  ;;  %v1209_v40 = vpop.f32.mrb[3].mxu0 }
 0x3f2   :  { %1367 = vtanh.f32 %v346_v39  ;;  %v1112_v42 = vmul.f32 -1.442695, %v346_v39 }
 0x3f4   :  { %1369 = vpow2.f32 %v1112_v42 }
 0x3fc   :  { %v1368_v41 = vpop.eup %1367 }
 0x3fd   :  { %356 = vrot.lane.b32.xlu0 %v1368_v41, %s1554_s8 }
 0x3fe   :  { %v1370_v43 = vpop.eup %1369 }
 0x3ff   :  { %v350_v44 = vadd.f32 1.0, %v1370_v43 }
 0x401   :  { %1371 = vrcp.f32 %v350_v44 }
 0x40b   :  { %v1372_v45 = vpop.eup %1371 }
 0x40c   :  { %v354_v48 = vmul.f32 %v1372_v45, %v260_v32 }
 0x46f   :  { %v357_v46 = vpop.permute.xlu0 %356 }
 0x470   :  { %v359_v47 = vmul.f32 %v1372_v45, %v357_v46 }
 0x472   :  { %361 = vrot.lane.b32.xlu1 %v359_v47, %s1555_s3 }
 0x4e4   :  { %v362_v49 = vpop.permute.xlu1 %361 }
 0x4e5   :  { %v364_v50 = vadd.f32 %v362_v49, %v354_v48  ;;  %v685_v49 = vld [vmem:[#allocation2 + $0x5] sm:$0x1] }
 0x4e7   :  { %1373 = vtanh.f32 %v364_v50 }
 0x4f1   :  { %v1374_v51 = vpop.eup %1373 }
 0x4f2   :  { %367 = vrot.lane.b32.xlu0 %v1374_v51, %s1554_s8 }
 0x564   :  { %v368_v52 = vpop.permute.xlu0 %367 }
 0x565   :  { %v370_v53 = vmul.f32 %v1372_v45, %v368_v52 }
 0x567   :  { %372 = vrot.lane.b32.xlu1 %v370_v53, %s1555_s3 }
 0x5d9   :  { %v373_v54 = vpop.permute.xlu1 %372 }
 0x5da   :  { %375 = vst.msk [vmem:[#allocation3 + $0x1] sm:$0x1] %vm271_vm2, %v373_v54  ;;  %1219 = vmatmul.mubr.msk.f32.vlgmr.msra.gmra.mrb[2].mxu1 %vm89_vm1, %v373_v54 }
 0x5db   :  { %1319 = vmatpush3.bf16.msra.mxu1 %v1655_v12  ;;  %1240 = vmatprep.mubr.msk.f32.mxu1 %vm1552_vm0, %v1553_v1 }
 0x5dc   :  { %1320 = vmatprep.subr.bf16.mxu1 %v1551_v0 }
 0x5df   :  { %1322 = vmatpush3.bf16.msra.mxu1 %v1659_v13 }
 0x5e0   :  { %1329 = vmatprep.subr.bf16.mxu1 %v1551_v0 }
 0x6ad   :  { %v445_v56 = vpop.f32.mrb[2].mxu1 }
 0x6ae   :  { %v449_v57 = vadd.f32 %v445_v56, %v376_v55  ;;  %v1220_v58 = vpop.f32.mrb[3].mxu1 }
 0x6b0   :  { %1375 = vtanh.f32 %v449_v57  ;;  %v1114_v60 = vmul.f32 -1.442695, %v449_v57 }
 0x6b2   :  { %1377 = vpow2.f32 %v1114_v60 }
 0x6ba   :  { %v1376_v59 = vpop.eup %1375 }
 0x6bb   :  { %459 = vrot.lane.b32.xlu0 %v1376_v59, %s1554_s8 }
 0x6bc   :  { %v1378_v61 = vpop.eup %1377 }
 0x6bd   :  { %v453_v62 = vadd.f32 1.0, %v1378_v61 }
 0x6bf   :  { %1379 = vrcp.f32 %v453_v62 }
 0x6c9   :  { %v1380_v63 = vpop.eup %1379 }
 0x6ca   :  { %v457_v4 = vmul.f32 %v1380_v63, %v364_v50 }
 0x72d   :  { %v460_v2 = vpop.permute.xlu0 %459 }
 0x72e   :  { %v462_v3 = vmul.f32 %v1380_v63, %v460_v2 }
 0x730   :  { %464 = vrot.lane.b32.xlu1 %v462_v3, %s1555_s3  ;;  %v788_v3 = vld [vmem:[#allocation2 + $0x6] sm:$0x1] }
 0x7a2   :  { %v465_v5 = vpop.permute.xlu1 %464 }
 0x7a3   :  { %v467_v6 = vadd.f32 %v465_v5, %v457_v4 }
 0x7a5   :  { %1381 = vtanh.f32 %v467_v6 }
 0x7af   :  { %v1382_v7 = vpop.eup %1381 }
 0x7b0   :  { %470 = vrot.lane.b32.xlu0 %v1382_v7, %s1554_s8 }
 0x822   :  { %v471_v8 = vpop.permute.xlu0 %470 }
 0x823   :  { %v473_v9 = vmul.f32 %v1380_v63, %v471_v8 }
 0x825   :  { %475 = vrot.lane.b32.xlu1 %v473_v9, %s1555_s3 }
 0x897   :  { %v476_v10 = vpop.permute.xlu1 %475 }
 0x898   :  { %478 = vst.msk [vmem:[#allocation3 + $0x2] sm:$0x1] %vm271_vm2, %v476_v10  ;;  %1230 = vmatmul.mubr.msk.f32.vlgmr.msra.gmra.mrb[4].mxu0 %vm89_vm1, %v476_v10 }
 0x899   :  { %1325 = vmatpush3.bf16.msra.mxu0 %v1655_v12  ;;  %1251 = vmatprep.mubr.msk.f32.mxu0 %vm1552_vm0, %v1553_v1 }
 0x89a   :  { %1326 = vmatprep.subr.bf16.mxu0 %v1551_v0 }
 0x89d   :  { %1328 = vmatpush3.bf16.msra.mxu0 %v1659_v13 }
 0x89e   :  { %1335 = vmatprep.subr.bf16.mxu0 %v1551_v0 }
 0x96b   :  { %v548_v14 = vpop.f32.mrb[4].mxu0 }
 0x96c   :  { %v552_v15 = vadd.f32 %v548_v14, %v479_v11  ;;  %v1231_v16 = vpop.f32.mrb[5].mxu0 }
 0x96e   :  { %1383 = vtanh.f32 %v552_v15  ;;  %v1116_v18 = vmul.f32 -1.442695, %v552_v15 }
 0x970   :  { %1385 = vpow2.f32 %v1116_v18 }
 0x978   :  { %v1384_v17 = vpop.eup %1383 }
 0x979   :  { %562 = vrot.lane.b32.xlu0 %v1384_v17, %s1554_s8 }
 0x97a   :  { %v1386_v19 = vpop.eup %1385 }
 0x97b   :  { %v556_v20 = vadd.f32 1.0, %v1386_v19 }
 0x97d   :  { %1387 = vrcp.f32 %v556_v20 }
 0x987   :  { %v1388_v21 = vpop.eup %1387 }
 0x988   :  { %v560_v24 = vmul.f32 %v1388_v21, %v467_v6 }
 0x9eb   :  { %v563_v22 = vpop.permute.xlu0 %562 }
 0x9ec   :  { %v565_v23 = vmul.f32 %v1388_v21, %v563_v22  ;;  %v891_v22 = vld [vmem:[#allocation2 + $0x7] sm:$0x1] }
 0x9ee   :  { %567 = vrot.lane.b32.xlu1 %v565_v23, %s1555_s3 }
 0xa60   :  { %v568_v25 = vpop.permute.xlu1 %567 }
 0xa61   :  { %v570_v26 = vadd.f32 %v568_v25, %v560_v24 }
 0xa63   :  { %1389 = vtanh.f32 %v570_v26 }
 0xa6d   :  { %v1390_v27 = vpop.eup %1389 }
 0xa6e   :  { %573 = vrot.lane.b32.xlu0 %v1390_v27, %s1554_s8 }
 0xae0   :  { %v574_v28 = vpop.permute.xlu0 %573 }
 0xae1   :  { %v576_v29 = vmul.f32 %v1388_v21, %v574_v28 }
 0xae3   :  { %578 = vrot.lane.b32.xlu1 %v576_v29, %s1555_s3 }
 0xb55   :  { %v579_v30 = vpop.permute.xlu1 %578 }
 0xb56   :  { %581 = vst.msk [vmem:[#allocation3 + $0x3] sm:$0x1] %vm271_vm2, %v579_v30  ;;  %1241 = vmatmul.mubr.msk.f32.vlgmr.msra.gmra.mrb[4].mxu1 %vm89_vm1, %v579_v30 }
 0xb57   :  { %1331 = vmatpush3.bf16.msra.mxu1 %v1655_v12  ;;  %1262 = vmatprep.mubr.msk.f32.mxu1 %vm1552_vm0, %v1553_v1 }
 0xb58   :  { %1332 = vmatprep.subr.bf16.mxu1 %v1551_v0 }
 0xb5b   :  { %1334 = vmatpush3.bf16.msra.mxu1 %v1659_v13 }
 0xb5c   :  { %1341 = vmatprep.subr.bf16.mxu1 %v1551_v0 }
 0xc29   :  { %v651_v32 = vpop.f32.mrb[4].mxu1 }
 0xc2a   :  { %v655_v33 = vadd.f32 %v651_v32, %v582_v31  ;;  %v1242_v34 = vpop.f32.mrb[5].mxu1 }
 0xc2c   :  { %1391 = vtanh.f32 %v655_v33  ;;  %v1118_v36 = vmul.f32 -1.442695, %v655_v33 }
 0xc2e   :  { %1393 = vpow2.f32 %v1118_v36 }
 0xc36   :  { %v1392_v35 = vpop.eup %1391 }
 0xc37   :  { %665 = vrot.lane.b32.xlu0 %v1392_v35, %s1554_s8 }
 0xc38   :  { %v1394_v37 = vpop.eup %1393 }
 0xc39   :  { %v659_v38 = vadd.f32 1.0, %v1394_v37  ;;  %v995_v37 = vld [vmem:[#allocation10] sm:$0xff] }
 0xc3b   :  { %1395 = vrcp.f32 %v659_v38  ;;  %v996_v38 = vld [vmem:[#allocation10 + $0x8] sm:$0xff] }
 0xc45   :  { %v1396_v39 = vpop.eup %1395 }
 0xc46   :  { %v663_v42 = vmul.f32 %v1396_v39, %v570_v26 }
 0xca9   :  { %v666_v40 = vpop.permute.xlu0 %665 }
 0xcaa   :  { %v668_v41 = vmul.f32 %v1396_v39, %v666_v40  ;;  %v1342_v40 = vpack.c.bf16 %v996_v38, %v995_v37 }
 0xcac   :  { %670 = vrot.lane.b32.xlu1 %v668_v41, %s1555_s3  ;;  %v998_v41 = vld [vmem:[#allocation10 + $0x18] sm:$0xff] }
 0xd1e   :  { %v671_v43 = vpop.permute.xlu1 %670 }
 0xd1f   :  { %v673_v44 = vadd.f32 %v671_v43, %v663_v42 }
 0xd21   :  { %1397 = vtanh.f32 %v673_v44 }
 0xd2b   :  { %v1398_v45 = vpop.eup %1397 }
 0xd2c   :  { %676 = vrot.lane.b32.xlu0 %v1398_v45, %s1554_s8 }
 0xd9e   :  { %v677_v46 = vpop.permute.xlu0 %676 }
 0xd9f   :  { %v679_v47 = vmul.f32 %v1396_v39, %v677_v46  ;;  %v997_v39 = vld [vmem:[#allocation10 + $0x10] sm:$0xff] }
 0xda0   :  { %v1345_v42 = vpack.c.bf16 %v998_v41, %v997_v39 }
 0xda1   :  { %681 = vrot.lane.b32.xlu1 %v679_v47, %s1555_s3  ;;  %v1125_v47 = vld [vmem:[%s1782_s5] ss:$0 sm:$0xff]  ;;  %s1515_s5 = scalar_lea.vmem %s1098_s24, 128 }
 0xda2   :  { %p1516_p4 = scmp.ne.s32.totalorder %s1098_s24, %s1515_s5  ;;  %p1521_p6 = scmp.lt.s32.totalorder %s1515_s5, %s1515_s5 }
 0xda4   :  { %p1522_p7 = por %p1521_p6, %p1520_p5 }
 0xda6   :  { %p1523_p8 = pnand %p1522_p7, %p1516_p4 }
 0xe13   :  { %v682_v48 = vpop.permute.xlu1 %681 }
 0xe14   :  { %684 = vst.msk [vmem:[#allocation3 + $0x4] sm:$0x1] %vm271_vm2, %v682_v48  ;;  %1252 = vmatmul.mubr.msk.f32.vlgmr.msra.gmra.mrb[6].mxu0 %vm89_vm1, %v682_v48 }
 0xe15   :  { %1337 = vmatpush3.bf16.msra.mxu0 %v1655_v12  ;;  %1273 = vmatprep.mubr.msk.f32.mxu0 %vm1552_vm0, %v1553_v1 }
 0xe16   :  { %1338 = vmatprep.subr.bf16.mxu0 %v1551_v0 }
 0xe19   :  { %1340 = vmatpush3.bf16.msra.mxu0 %v1659_v13 }
 0xee7   :  { %v754_v50 = vpop.f32.mrb[6].mxu0 }
 0xee8   :  { %v758_v51 = vadd.f32 %v754_v50, %v685_v49  ;;  %v1253_v52 = vpop.f32.mrb[7].mxu0 }
 0xeea   :  { %1399 = vtanh.f32 %v758_v51  ;;  %v1120_v54 = vmul.f32 -1.442695, %v758_v51 }
 0xeec   :  { %1401 = vpow2.f32 %v1120_v54 }
 0xef4   :  { %v1400_v53 = vpop.eup %1399 }
 0xef5   :  { %768 = vrot.lane.b32.xlu0 %v1400_v53, %s1554_s8 }
 0xef6   :  { %v1402_v55 = vpop.eup %1401 }
 0xef7   :  { %v762_v56 = vadd.f32 1.0, %v1402_v55 }
 0xef9   :  { %1403 = vrcp.f32 %v762_v56 }
 0xf03   :  { %v1404_v12 = vpop.eup %1403 }
 0xf04   :  { %v766_v59 = vmul.f32 %v1404_v12, %v673_v44 }
 0xf67   :  { %v769_v57 = vpop.permute.xlu0 %768 }
 0xf68   :  { %v771_v58 = vmul.f32 %v1404_v12, %v769_v57 }
 0xf6a   :  { %773 = vrot.lane.b32.xlu1 %v771_v58, %s1555_s3 }
 0xfdc   :  { %v774_v13 = vpop.permute.xlu1 %773 }
 0xfdd   :  { %v776_v60 = vadd.f32 %v774_v13, %v766_v59 }
 0xfdf   :  { %1405 = vtanh.f32 %v776_v60 }
 0xfe9   :  { %v1406_v61 = vpop.eup %1405 }
 0xfea   :  { %779 = vrot.lane.b32.xlu0 %v1406_v61, %s1554_s8 }
0x105c   :  { %v780_v62 = vpop.permute.xlu0 %779 }
0x105d   :  { %v782_v63 = vmul.f32 %v1404_v12, %v780_v62 }
0x105f   :  { %784 = vrot.lane.b32.xlu1 %v782_v63, %s1555_s3 }
0x10d1   :  { %v785_v2 = vpop.permute.xlu1 %784 }
0x10d2   :  { %787 = vst.msk [vmem:[#allocation3 + $0x5] sm:$0x1] %vm271_vm2, %v785_v2  ;;  %1263 = vmatmul.mubr.msk.f32.vlgmr.msra.gmra.mrb[6].mxu1 %vm89_vm1, %v785_v2 }
0x10d3   :  { %1284 = vmatprep.mubr.msk.f32.mxu1 %vm1552_vm0, %v1553_v1  ;;  %1343 = vmatpush3.bf16.msra.mxu1 %v1342_v40 }
0x10d4   :  { %1344 = vmatprep.subr.bf16.mxu1 %v1551_v0 }
0x10d7   :  { %1346 = vmatpush3.bf16.msra.mxu1 %v1345_v42 }
0x11a5   :  { %v857_v4 = vpop.f32.mrb[6].mxu1 }
0x11a6   :  { %v861_v5 = vadd.f32 %v857_v4, %v788_v3  ;;  %v1264_v6 = vpop.f32.mrb[7].mxu1 }
0x11a8   :  { %1407 = vtanh.f32 %v861_v5  ;;  %v1122_v8 = vmul.f32 -1.442695, %v861_v5 }
0x11aa   :  { %1409 = vpow2.f32 %v1122_v8 }
0x11b2   :  { %v1408_v7 = vpop.eup %1407 }
0x11b3   :  { %871 = vrot.lane.b32.xlu0 %v1408_v7, %s1554_s8 }
0x11b4   :  { %v1410_v9 = vpop.eup %1409 }
0x11b5   :  { %v865_v10 = vadd.f32 1.0, %v1410_v9 }
0x11b7   :  { %1411 = vrcp.f32 %v865_v10 }
0x11c1   :  { %v1412_v11 = vpop.eup %1411 }
0x11c2   :  { %v869_v16 = vmul.f32 %v1412_v11, %v776_v60 }
0x1225   :  { %v872_v14 = vpop.permute.xlu0 %871 }
0x1226   :  { %v874_v15 = vmul.f32 %v1412_v11, %v872_v14 }
0x1228   :  { %876 = vrot.lane.b32.xlu1 %v874_v15, %s1555_s3 }
0x129a   :  { %v877_v1 = vpop.permute.xlu1 %876 }
0x129b   :  { %v879_v17 = vadd.f32 %v877_v1, %v869_v16 }
0x129d   :  { %1413 = vtanh.f32 %v879_v17 }
0x12a7   :  { %v1414_v18 = vpop.eup %1413 }
0x12a8   :  { %882 = vrot.lane.b32.xlu0 %v1414_v18, %s1554_s8 }
0x131a   :  { %v883_v19 = vpop.permute.xlu0 %882 }
0x131b   :  { %v885_v20 = vmul.f32 %v1412_v11, %v883_v19 }
0x131d   :  { %887 = vrot.lane.b32.xlu1 %v885_v20, %s1555_s3 }
0x138f   :  { %v888_v21 = vpop.permute.xlu1 %887 }
0x1390   :  { %890 = vst.msk [vmem:[#allocation3 + $0x6] sm:$0x1] %vm271_vm2, %v888_v21  ;;  %1274 = vmatmul.mubr.msk.f32.vlgmr.msra.gmra.mrb[8].mxu0 %vm89_vm1, %v888_v21 }
0x1463   :  { %v960_v23 = vpop.f32.mrb[8].mxu0 }
0x1464   :  { %v964_v24 = vadd.f32 %v960_v23, %v891_v22  ;;  %v1275_v25 = vpop.f32.mrb[9].mxu0 }
0x1466   :  { %1415 = vtanh.f32 %v964_v24  ;;  %v1124_v27 = vmul.f32 -1.442695, %v964_v24 }
0x1468   :  { %1417 = vpow2.f32 %v1124_v27 }
0x1470   :  { %v1416_v26 = vpop.eup %1415 }
0x1471   :  { %974 = vrot.lane.b32.xlu0 %v1416_v26, %s1554_s8 }
0x1472   :  { %v1418_v28 = vpop.eup %1417 }
0x1473   :  { %v968_v29 = vadd.f32 1.0, %v1418_v28 }
0x1475   :  { %1419 = vrcp.f32 %v968_v29 }
0x147f   :  { %v1420_v30 = vpop.eup %1419 }
0x1480   :  { %v972_v33 = vmul.f32 %v1420_v30, %v879_v17 }
0x14e3   :  { %v975_v31 = vpop.permute.xlu0 %974 }
0x14e4   :  { %v977_v32 = vmul.f32 %v1420_v30, %v975_v31 }
0x14e6   :  { %979 = vrot.lane.b32.xlu1 %v977_v32, %s1555_s3 }
0x1558   :  { %v980_v34 = vpop.permute.xlu1 %979 }
0x1559   :  { %v982_v35 = vadd.f32 %v980_v34, %v972_v33 }
0x155b   :  { %1421 = vtanh.f32 %v982_v35 }
0x1565   :  { %v1422_v36 = vpop.eup %1421 }
0x1566   :  { %985 = vrot.lane.b32.xlu0 %v1422_v36, %s1554_s8 }
0x15d8   :  { %v986_v43 = vpop.permute.xlu0 %985 }
0x15d9   :  { %v988_v44 = vmul.f32 %v1420_v30, %v986_v43 }
0x15db   :  { %990 = vrot.lane.b32.xlu1 %v988_v44, %s1555_s3 }
0x164d   :  { %v991_v45 = vpop.permute.xlu1 %990 }
0x164e   :  { %993 = vst.msk [vmem:[#allocation3 + $0x7] sm:$0x1] %vm271_vm2, %v991_v45 }
0x1655   :  { %v994_v46 = vld [vmem:[#allocation3] sm:$0xff] }
0x1656   :  { %1285 = vmatmul.mubr.msk.f32.vlgmr.msra.gmra.mrb[8].mxu1 %vm89_vm1, %v994_v46 }
0x1729   :  { %v1075_v48 = vpop.f32.mrb[8].mxu1 }
0x172a   :  { %v1076_v49 = vadd.f32 %v1125_v47, %v1075_v48  ;;  %v1286_v50 = vpop.f32.mrb[9].mxu1 }
0x172c   :  { %1079 = vmax.xlane.f32.xlu0 %v1076_v49 }
0x17b9   :  { %v1080_v0 = vpop.xlane.xlu0 %1079 }
0x17ba   :  { %v1081_v51 = vsub.f32 %v1076_v49, %v1080_v0 }
0x17bc   :  { %v1082_v52 = vmul.f32 1.442695, %v1081_v51 }
0x17be   :  { %1423 = vpow2.f32 %v1082_v52 }
0x17c8   :  { %v1424_v53 = vpop.eup %1423 }
0x17c9   :  { %1084 = vadd.xlane.f32.xlu1 %v1424_v53 }
0x1856   :  { %v1085_v54 = vpop.xlane.xlu1 %1084 }
0x1857   :  { %1425 = vlog2.f32 %v1085_v54 }
0x1861   :  { %v1426_v55 = vpop.eup %1425 }
0x1862   :  { %v1087_v56 = vmul.f32 0.6931472, %v1426_v55 }
0x1864   :  { %v1088_v12 = vadd.f32 %v1087_v56, %v1080_v0 }
0x1866   :  { %v1089_v57 = vsub.f32 %v1076_v49, %v1088_v12 }
0x1868   :  { %1090 = vst [vmem:[#allocation12] sm:$0xff] %v1089_v57 }
0x1869   :  { %1526 = shalt.err (!%p1523_p8)
}
0x186a   :  { %s1527_s27 = scalar_lea.hbm %s1783_s6, 128 }
0x186b   :  { %p1528_p9 = scmp.ne.s32.totalorder %s1783_s6, %s1527_s27  ;;  %p1531_p10 = scmp.lt.u32.totalorder %s1527_s27, %s1783_s6 }
0x186d   :  { %p1533_p11 = pnand %p1531_p10, %p1528_p9 }
0x186f   :  { %1536 = shalt.err (!%p1533_p11)
}
0x1870   :  { %1100 = dma.vmem_to_hbm [thread:$0]  %s1098_s24, 128, %s1783_s6, [#allocation6]  }
0x1871   :  { %1543 = dma.done.wait [#allocation6], 128  }
0x1872   :  { %1544 = vsyncadd [#allocation6], 4294967168 }
0x1873   :  { %1104 = vsyncpa [#allocation5], 1 }
0x1874   :  { %1105 = vsyncpa [#allocation8], 1 }
0x1875   :  { %1106 = vsyncpa [#allocation11], 1 }
0x1876   :  { %1107 = vsyncpa [#allocation6], 1 }

</bundles_post_ra>
